<compile_context>
chip_gen: v5e
topology: v5e:2x2
jax: 0.10.0
libtpu: 0.0.40
codegen_flags: <defaults>
</compile_context>

<pallas_src>
import functools
import math

import jax
import jax.numpy as jnp
from jax import lax
from jax.experimental import pallas as pl
from jax.experimental.pallas import tpu as pltpu


# Footprint target for one grid block (input + output double buffers + f32
# temporaries).  40 MiB keeps comfortable headroom inside v7x's 64 MiB/TC VMEM;
# on v5e/v6e (128 MiB) both constants can be roughly doubled.
_VMEM_BUDGET_BYTES = 40 * 1024 * 1024
_VMEM_LIMIT_BYTES = 48 * 1024 * 1024


def _gaussian_taps_1d(kernel_size: int, sigma: float):
    """Normalized 1D taps mirroring the torch module exactly — including its
    (x - mean) / (2 * sigma) quirk (effective std is sigma*sqrt(2)).  Do NOT
    "fix" this; it must match the reference module.  The module's 2D kernel is
    the normalized outer product of these taps, so the conv is exactly
    separable."""
    mean = (kernel_size - 1) / 2.0
    taps = [
        (1.0 / (sigma * math.sqrt(2.0 * math.pi)))
        * math.exp(-(((i - mean) / (2.0 * sigma)) ** 2))
        for i in range(kernel_size)
    ]
    s = sum(taps)
    return tuple(t / s for t in taps)


def _make_gaussian_weight(channels: int, kernel_size: int, sigma: float, dim: int = 2):
    """Mirror of GaussianSmoothing.__init__ weight construction (for the reference)."""
    ksizes = [kernel_size] * dim
    sigmas = [sigma] * dim
    grids = jnp.meshgrid(
        *[jnp.arange(s, dtype=jnp.float32) for s in ksizes], indexing="ij"
    )
    kernel = jnp.ones((), dtype=jnp.float32)
    for size, std, mgrid in zip(ksizes, sigmas, grids):
        mean = (size - 1) / 2.0
        kernel = kernel * (
            1.0 / (std * math.sqrt(2.0 * math.pi))
            * jnp.exp(-(((mgrid - mean) / (2.0 * std)) ** 2))
        )
    kernel = kernel / jnp.sum(kernel)
    kernel = kernel.reshape(1, 1, *kernel.shape)       # (1, 1, KH, KW)
    kernel = jnp.tile(kernel, (channels, 1, 1, 1))     # (C, 1, KH, KW)
    return kernel


def _choose_block_channels(nc, h, w, oh, ow, in_bytes, out_bytes) -> int:
    """Largest channel-block that (a) fits the VMEM budget including double
    buffering and f32 temporaries, and (b) leaves >= 2 grid blocks for
    megacore sharding.  Prefers a divisor of nc (no ragged final block)."""
    per_plane = (
        2 * h * w * in_bytes          # input block, double-buffered
        + 2 * oh * ow * out_bytes     # output block, double-buffered
        + oh * (w + ow) * 4           # f32 acc_v + acc temporaries
    )
    bc = max(1, _VMEM_BUDGET_BYTES // per_plane)
    if nc >= 2:
        bc = min(bc, (nc + 1) // 2)   # keep >= 2 grid blocks (v7x has 2 TCs)
    bc = int(min(bc, nc))
    # Prefer a nearby divisor of nc so every block is full.
    for d in range(bc, max(bc // 2, 1) - 1, -1):
        if nc % d == 0:
            return d
    return bc


def _smooth_kernel(x_ref, o_ref, *, wv, wh, oh, ow):
    # x_ref: (BC, H,  W)  input planes (full plane per block, no lane padding)
    # o_ref: (BC, OH, OW) output planes (full OW; final lane tile store is masked)
    kh, kw = len(wv), len(wh)

    # Vertical pass (KH taps along the sublane/H axis), f32 accumulation.
    # The cast is folded into each tap read — no full-block f32 temporary.
    acc_v = wv[0] * x_ref[:, 0:oh, :].astype(jnp.float32)
    for di in range(1, kh):
        acc_v = acc_v + wv[di] * x_ref[:, di:di + oh, :].astype(jnp.float32)

    # Horizontal pass (KW taps along the lane/W axis): (BC, OH, OW).
    acc = wh[0] * acc_v[:, :, 0:ow]
    for dj in range(1, kw):
        acc = acc + wh[dj] * acc_v[:, :, dj:dj + ow]

    o_ref[...] = acc.astype(o_ref.dtype)


def gaussian_smoothing(x, kernel_size: int = 3, sigma: float = 0.5, *, block_channels=None):
    """Depthwise Gaussian conv, stride 1, VALID padding. x: (N, C, H, W)."""
    n, c, h, w = x.shape
    wv = _gaussian_taps_1d(kernel_size, sigma)   # vertical taps (scalar f32 constants)
    wh = wv                                      # horizontal taps (same 1D profile)
    kh, kw = len(wv), len(wh)
    oh, ow = h - kh + 1, w - kw + 1
    assert oh >= 1 and ow >= 1, "kernel_size larger than spatial dims"

    nc = n * c
    in_bytes = jnp.dtype(x.dtype).itemsize
    out_bytes = in_bytes
    bc = block_channels or _choose_block_channels(nc, h, w, oh, ow, in_bytes, out_bytes)
    grid = (pl.cdiv(nc, bc),)                    # ragged final block handled by Pallas

    xf = x.reshape(nc, h, w)                     # pure reshape, no HBM pass

    kernel = functools.partial(_smooth_kernel, wv=wv, wh=wh, oh=oh, ow=ow)

    out = pl.pallas_call(
        kernel,
        out_shape=jax.ShapeDtypeStruct((nc, oh, ow), x.dtype),
        grid=grid,
        # Last two block dims equal the full array dims -> exempt from the
        # (8, 128) divisibility rule; no pad / crop needed in the wrapper.
        in_specs=[pl.BlockSpec((bc, h, w), lambda i: (i, 0, 0))],
        out_specs=pl.BlockSpec((bc, oh, ow), lambda i: (i, 0, 0)),
        compiler_params=pltpu.CompilerParams(
            dimension_semantics=("parallel",),
            vmem_limit_bytes=_VMEM_LIMIT_BYTES,
        ),
    )(xf)

    return out.reshape(n, c, oh, ow)


def _reference(x, weight):
    cc = x.shape[1]
    return lax.conv_general_dilated(
        x, weight, window_strides=(1, 1), padding="VALID",
        dimension_numbers=("NCHW", "OIHW", "NCHW"),
        feature_group_count=cc,
    )


if __name__ == "__main__":
    channels, kernel_size, sigma = 4, 3, 0.5

    key = jax.random.PRNGKey(0)
    x = jax.random.normal(key, (2, channels, 16, 16), dtype=jnp.float32)

    out = gaussian_smoothing(x, kernel_size=kernel_size, sigma=sigma)
    out = jax.block_until_ready(out)

    weight2d = _make_gaussian_weight(channels, kernel_size, sigma, dim=2)
    ref = _reference(x, weight2d.astype(x.dtype))

    assert out.shape == ref.shape == (2, channels, 14, 14)
    assert jnp.allclose(out, ref, atol=1e-5, rtol=1e-5)

    print("KERNEL_OK")
</pallas_src>

<mosaic_0001>
module attributes {stable_mosaic.version = 11 : i64} {
  func.func @_smooth_kernel(%arg0: i32, %arg1: memref<4x16x16xf32, #tpu.memory_space<vmem>>, %arg2: memref<4x14x14xf32, #tpu.memory_space<vmem>>) attributes {dimension_semantics = [#tpu.dimension_semantics<parallel>], iteration_bounds = array<i64: 2>, scalar_prefetch = 0 : i64, scratch_operands = 0 : i64, tpu.core_type = #tpu.core_type<tc>, window_params = [{transform_indices = @transform_0, window_bounds = array<i64: 4, 16, 16>}, {transform_indices = @transform_1, window_bounds = array<i64: 4, 14, 14>}]} {
    %c0 = arith.constant 0 : index
    %c0_0 = arith.constant 0 : index
    %c0_1 = arith.constant 0 : index
    %0 = vector.load %arg1[%c0, %c0_0, %c0_1] : memref<4x16x16xf32, #tpu.memory_space<vmem>>, vector<4x14x16xf32>
    %cst = arith.constant 0.211941555 : f32
    %1 = vector.broadcast %cst : f32 to vector<4x14x16xf32>
    %2 = arith.mulf %1, %0 : vector<4x14x16xf32>
    %c0_2 = arith.constant 0 : index
    %c1 = arith.constant 1 : index
    %c0_3 = arith.constant 0 : index
    %3 = vector.load %arg1[%c0_2, %c1, %c0_3] : memref<4x16x16xf32, #tpu.memory_space<vmem>>, vector<4x14x16xf32>
    %cst_4 = arith.constant 0.57611686 : f32
    %4 = vector.broadcast %cst_4 : f32 to vector<4x14x16xf32>
    %5 = arith.mulf %4, %3 : vector<4x14x16xf32>
    %6 = arith.addf %2, %5 : vector<4x14x16xf32>
    %c0_5 = arith.constant 0 : index
    %c2 = arith.constant 2 : index
    %c0_6 = arith.constant 0 : index
    %7 = vector.load %arg1[%c0_5, %c2, %c0_6] : memref<4x16x16xf32, #tpu.memory_space<vmem>>, vector<4x14x16xf32>
    %cst_7 = arith.constant 0.211941555 : f32
    %8 = vector.broadcast %cst_7 : f32 to vector<4x14x16xf32>
    %9 = arith.mulf %8, %7 : vector<4x14x16xf32>
    %10 = arith.addf %6, %9 : vector<4x14x16xf32>
    %11 = vector.extract_strided_slice %10 {offsets = [0, 0, 0], sizes = [4, 14, 14], strides = [1, 1, 1]} : vector<4x14x16xf32> to vector<4x14x14xf32>
    %cst_8 = arith.constant 0.211941555 : f32
    %12 = vector.broadcast %cst_8 : f32 to vector<4x14x14xf32>
    %13 = arith.mulf %12, %11 : vector<4x14x14xf32>
    %14 = vector.extract_strided_slice %10 {offsets = [0, 0, 1], sizes = [4, 14, 14], strides = [1, 1, 1]} : vector<4x14x16xf32> to vector<4x14x14xf32>
    %cst_9 = arith.constant 0.57611686 : f32
    %15 = vector.broadcast %cst_9 : f32 to vector<4x14x14xf32>
    %16 = arith.mulf %15, %14 : vector<4x14x14xf32>
    %17 = arith.addf %13, %16 : vector<4x14x14xf32>
    %18 = vector.extract_strided_slice %10 {offsets = [0, 0, 2], sizes = [4, 14, 14], strides = [1, 1, 1]} : vector<4x14x16xf32> to vector<4x14x14xf32>
    %cst_10 = arith.constant 0.211941555 : f32
    %19 = vector.broadcast %cst_10 : f32 to vector<4x14x14xf32>
    %20 = arith.mulf %19, %18 : vector<4x14x14xf32>
    %21 = arith.addf %17, %20 : vector<4x14x14xf32>
    %c0_11 = arith.constant 0 : index
    %c0_12 = arith.constant 0 : index
    %c0_13 = arith.constant 0 : index
    %22 = vector.load %arg2[%c0_11, %c0_12, %c0_13] : memref<4x14x14xf32, #tpu.memory_space<vmem>>, vector<4x14x14xf32>
    tpu.vector_store %arg2[%c0_11, %c0_12, %c0_13], %21 {strides = array<i32>} : memref<4x14x14xf32, #tpu.memory_space<vmem>>, vector<4x14x14xf32>,
    return
  }
  func.func @transform_0(%arg0: i32) -> (i32, i32, i32) {
    %c0_i32 = arith.constant 0 : i32
    %c0_i32_0 = arith.constant 0 : i32
    %c0_i32_1 = arith.constant 0 : i32
    return %arg0, %c0_i32, %c0_i32_0 : i32, i32, i32
  }
  func.func @transform_1(%arg0: i32) -> (i32, i32, i32) {
    %c0_i32 = arith.constant 0 : i32
    %c0_i32_0 = arith.constant 0 : i32
    %c0_i32_1 = arith.constant 0 : i32
    return %arg0, %c0_i32, %c0_i32_0 : i32, i32, i32
  }
}

</mosaic_0001>

<bundles_post_ra>
// kernel: tpu_custom_call.1
= control target key start
LH: loop header
LB: loop body
LE: loop exit
PB: predicated region body
PF: predicated region fallthrough
CT: control target
= control target key end

     0   :  { %6 = vsyncpa [#allocation3], 0  ;;  %s671_s0 = inlined_call_operand.hbm [shape: f32[8,16,16], index: 0, kind: input, shape index: {}]   ;;  %s672_s1 = inlined_call_operand.vmem [shape: f32[8,14,14], index: 1, kind: output, shape index: {}]  }
   0x1   :  { %8 = vsyncpa [#allocation3 + $0x1], 0  ;;  %s524_s6 = smov 0   ;;  %s526_s7 = smov 0  }
   0x2   :  { %s528_s8 = smov 0   ;;  %s530_s9 = smov 0  }
   0x3 LB: > { %s383_s10 = sadd.s32 4294967295, %s508_s9   ;;  %s544_s11 = sadd.s32 1, %s508_s9   ;;  %s508_s9 = sphi %s530_s9, %s679_s9   ;;  %s504_s8 = sphi %s528_s8, %s678_s8   ;;  %s500_s7 = sphi %s526_s7, %s677_s7   ;;  %s496_s6 = sphi %s524_s6, %s676_s6  }
   0x4   : > { %s18_s12 = ssub.s32 %s508_s9, %s544_s11  ;;  %s21_s13 = sadd.s32 1, %s504_s8 }
   0x5   : > { %p19_p0 = scmp.eq.s32.totalorder %s18_s12, 0  ;;  %p28_p1 = scmp.ne.s32.totalorder %s504_s8, %s500_s7 }
   0x6   : > { %p29_p2 = scmp.eq.s32.totalorder %s508_s9, 0  ;;  %p34_p3 = scmp.ne.s32.totalorder %s500_s7, %s496_s6 }
   0x7   : > { %s554_s14 = scalar_select %p19_p0, %s504_s8, %s21_s13  }
   0x8   : > { %p556_p4 = por %p29_p2, %p28_p1  ;;  %p35_p5 = scmp.eq.s32.totalorder %s383_s10, 0 }
   0x9   : > { %p407_p6 = scmp.lt.s32.totalorder %s508_s9, 2  ;;  %s84_s17 = sand.u32 1, %s504_s8  }
   0xa   : > { %p563_p7 = por %p35_p5, %p34_p3  ;;  %s387_s18 = sshll.u32 %s84_s17, 6 }
   0xb   : > { %s399_s19 = sshll.u32 %s508_s9, 6  ;;  %s88_s23 = scalar_lea.vmem [#allocation2], %s387_s18 }
   0xc   : > { %s94_s22 = scalar_lea.hbm %s671_s0, %s399_s19  ;;  %s97_s24 = sshll.u32 %s88_s23, 4  ;;  %s98_s24 = int_to_ptr.vmem [resolvable:$true] %s97_s24 }
   0xd   : > { %s95_s25 = sshll.u32 %s94_s22, 4  ;;  %p574_p8 = pnand %p407_p6, %p556_p4  ;;  %s96_s25 = int_to_ptr.hbm [resolvable:$true] %s95_s25 }
   0xe   : > { %p391_p9 = scmp.ge.s32.totalorder %s508_s9, 1  ;;  %s85_s27 = scalar_lea.sflag [#allocation3], %s84_s17 }
   0xf   : > { %s444_s28 = sshra.s32 %s96_s25, 4  ;;  %p448_p11 = pneg %p574_p8  ;;  %s445_s28 = int_to_ptr.hbm [resolvable:$true] %s444_s28 }
  0x10   : > { %s446_s29 = scalar_lea.hbm %s445_s28, 64  ;;  %s451_s3 = scalar_lea.hbm %s671_s0, 128 }
  0x11   : > { %p447_p10 = scmp.ne.s32.totalorder %s445_s28, %s446_s29  ;;  %p452_p0 = scmp.lt.s32.totalorder %s445_s28, %s671_s0 }
  0x12   : > { %p453_p1 = scmp.lt.s32.totalorder %s451_s3, %s446_s29 }
  0x13   : > { %p449_p12 = pnand %p448_p11, %p447_p10 }
  0x14   : > { %p454_p2 = por %p453_p1, %p452_p0 }
  0x15   : > { %p450_p13 = pneg %p449_p12 }
  0x17   : > { %p455_p3 = pnand %p454_p2, %p450_p13 }
  0x19   : > { %458 = shalt.err (!%p455_p3)
}
  0x1a   : > { %s510_s6 = smov 128   ;;  %s511_s12 = smov 8  }
  0x1b   : > { %406 = dma.hbm_to_vmem [thread:$0]  (!%p574_p8), %s96_s25, 1024, %s98_s24, %s85_s27, %s510_s6, %s510_s6, %s511_s12  }
  0x1c   : > { %p105_p4 = scmp.lt.s32.totalorder %s508_s9, 3 }
  0x1e   : > { %p106_p5 = pnand %p391_p9, %p105_p4 }
  0x1f   : > { %s111_s13 = sand.u32 (!%p106_p5), 1, %s500_s7  }
  0x20   : > { %109 = sbr.rel (%p106_p5) target bundleno = 207 (0xcf), region = 24  ;;  %s392_s15 = sshll.u32 (!%p106_p5), %s111_s13, 6 }
  0x21   : > { %s112_s17 = scalar_lea.sflag (!%p106_p5), [#allocation3], %s111_s13  ;;  %s593_s18 = scalar_lea.vmem (!%p106_p5), [#allocation2], %s392_s15 }
  0x25   : > { %491 = dma.done.wait (%p563_p7), %s112_s17, 1024  }
  0x26   : > { %493 = vsyncadd (%p563_p7), %s112_s17, 4294966272  ;;  %v146_v0 = vld [vmem:[%s593_s18 + $0x10] sm:$0xff]  ;;  %v144_v6 = vld [vmem:[%s593_s18] sm:$0xff]  ;;  %s512_s16 = smov 127   ;;  %s513_s19 = smov 126   ;;  %vm306_vm0 = vcmask 111616  }
  0x27   : > { %v162_v1 = vld [vmem:[%s593_s18 + $0x11] sm:$0xff]  ;;  %v154_v3 = vmul.f32 0.21194156, %v146_v0  ;;  %v160_v7 = vld [vmem:[%s593_s18 + $0x1] sm:$0xff]  ;;  %v152_v10 = vmul.f32 0.21194156, %v144_v6 }
  0x28   : > { %v186_v2 = vld [vmem:[%s593_s18 + $0x12] sm:$0xff]  ;;  %v170_v4 = vmul.f32 0.57611686, %v162_v1  ;;  %v184_v8 = vld [vmem:[%s593_s18 + $0x2] sm:$0xff]  ;;  %v168_v11 = vmul.f32 0.57611686, %v160_v7 }
  0x29   : > { %v194_v5 = vmul.f32 0.21194156, %v186_v2  ;;  %v192_v12 = vmul.f32 0.21194156, %v184_v8  ;;  %v147_v13 = vld [vmem:[%s593_s18 + $0x18] sm:$0x3f] }
  0x2a   : > { %v178_v9 = vadd.f32 %v170_v4, %v154_v3  ;;  %v163_v14 = vld [vmem:[%s593_s18 + $0x19] sm:$0x3f]  ;;  %v176_v17 = vadd.f32 %v168_v11, %v152_v10  ;;  %v155_v18 = vmul.f32 0.21194156, %v147_v13  ;;  %v145_v20 = vld [vmem:[%s593_s18 + $0x8] sm:$0x3f] }
  0x2b   : > { %v187_v15 = vld [vmem:[%s593_s18 + $0x1a] sm:$0x3f]  ;;  %v171_v19 = vmul.f32 0.57611686, %v163_v14  ;;  %v153_v22 = vmul.f32 0.21194156, %v145_v20 }
  0x2c   : > { %v608_v16 = vadd.f32 %v194_v5, %v178_v9  ;;  %v195_v21 = vmul.f32 0.21194156, %v187_v15  ;;  %v161_v23 = vld [vmem:[%s593_s18 + $0x9] sm:$0x3f]  ;;  %v200_v25 = vadd.f32 %v192_v12, %v176_v17  ;;  %v148_v30 = vld [vmem:[%s593_s18 + $0x20] sm:$0xff]  ;;  %v150_v50 = vld [vmem:[%s593_s18 + $0x30] sm:$0xff] }
  0x2d   : > { %v179_v26 = vadd.f32 %v171_v19, %v155_v18  ;;  %v169_v27 = vmul.f32 0.57611686, %v161_v23  ;;  %v185_v28 = vld [vmem:[%s593_s18 + $0xa] sm:$0x3f]  ;;  %v164_v31 = vld [vmem:[%s593_s18 + $0x21] sm:$0xff]  ;;  %v166_v51 = vld [vmem:[%s593_s18 + $0x31] sm:$0xff] }
  0x2e   : > { %v218_v24 = vmul.f32 0.57611686, %v608_v16  ;;  %v193_v29 = vmul.f32 0.21194156, %v185_v28  ;;  %v188_v32 = vld [vmem:[%s593_s18 + $0x22] sm:$0xff]  ;;  %v190_v61 = vld [vmem:[%s593_s18 + $0x32] sm:$0xff] }
  0x2f   : > { %v216_v33 = vmul.f32 0.57611686, %v200_v25  ;;  %v203_v34 = vadd.f32 %v195_v21, %v179_v26  ;;  %v177_v35 = vadd.f32 %v169_v27, %v153_v22  ;;  %v156_v36 = vmul.f32 0.21194156, %v148_v30  ;;  %v149_v41 = vld [vmem:[%s593_s18 + $0x28] sm:$0x3f] }
  0x30   : > { %236 = vrot.lane.b32.xlu1 %v218_v24, %s512_s16  ;;  %v172_v37 = vmul.f32 0.57611686, %v164_v31  ;;  %v196_v38 = vmul.f32 0.21194156, %v188_v32  ;;  %v151_v45 = vld [vmem:[%s593_s18 + $0x38] sm:$0x3f] }
  0x31   : > { %232 = vrot.lane.b32.xlu0 %v216_v33, %s512_s16  ;;  %v201_v39 = vadd.f32 %v193_v29, %v177_v35  ;;  %v219_v42 = vmul.f32 0.57611686, %v203_v34  ;;  %v157_v46 = vmul.f32 0.21194156, %v149_v41  ;;  %v165_v47 = vld [vmem:[%s593_s18 + $0x29] sm:$0x3f] }
  0x32   : > { %v180_v40 = vadd.f32 %v172_v37, %v156_v36  ;;  %v173_v48 = vmul.f32 0.57611686, %v165_v47  ;;  %v189_v49 = vld [vmem:[%s593_s18 + $0x2a] sm:$0x3f]  ;;  %v167_v53 = vld [vmem:[%s593_s18 + $0x39] sm:$0x3f] }
  0x33   : > { %v217_v43 = vmul.f32 0.57611686, %v201_v39  ;;  %v197_v54 = vmul.f32 0.21194156, %v189_v49  ;;  %v158_v56 = vmul.f32 0.21194156, %v150_v50 }
  0x34   : > { %v204_v44 = vadd.f32 %v196_v38, %v180_v40  ;;  %v181_v55 = vadd.f32 %v173_v48, %v157_v46  ;;  %v174_v57 = vmul.f32 0.57611686, %v166_v51  ;;  %v159_v58 = vmul.f32 0.21194156, %v151_v45  ;;  %v191_v62 = vld [vmem:[%s593_s18 + $0x3a] sm:$0x3f] }
  0x35   : > { %v175_v59 = vmul.f32 0.57611686, %v167_v53  ;;  %v209_v63 = vmul.f32 0.21194156, %v201_v39  ;;  %v198_v2 = vmul.f32 0.21194156, %v190_v61 }
  0x36   : > { %v220_v52 = vmul.f32 0.57611686, %v204_v44  ;;  %v205_v60 = vadd.f32 %v197_v54, %v181_v55  ;;  %v182_v1 = vadd.f32 %v174_v57, %v158_v56  ;;  %v208_v3 = vmul.f32 0.21194156, %v200_v25  ;;  %s393_s20 = sshll.u32 %s383_s10, 2 }
  0x37   : > { %v183_v4 = vadd.f32 %v175_v59, %v159_v58  ;;  %v199_v5 = vmul.f32 0.21194156, %v191_v62  ;;  %v210_v8 = vmul.f32 0.21194156, %v608_v16  ;;  %v211_v12 = vmul.f32 0.21194156, %v203_v34 }
  0x38   : > { %238 = vrot.lane.b32.xlu1 %v219_v42, %s512_s16  ;;  %240 = vrot.lane.b32.xlu2 %v220_v52, %s512_s16  ;;  %v221_v0 = vmul.f32 0.57611686, %v205_v60  ;;  %v206_v6 = vadd.f32 %v198_v2, %v182_v1  ;;  %v213_v11 = vmul.f32 0.21194156, %v205_v60  ;;  %v212_v13 = vmul.f32 0.21194156, %v204_v44 }
  0x39   : > { %234 = vrot.lane.b32.xlu0 %v217_v43, %s512_s16  ;;  %v207_v7 = vadd.f32 %v199_v5, %v183_v4  ;;  %p138_p6 = scmp.lt.s32.totalorder %s393_s20, 7  ;;  %vm304_vm1 = vcmask 113664  }
  0x3a   : > { %v222_v9 = vmul.f32 0.57611686, %v206_v6  ;;  %v214_v14 = vmul.f32 0.21194156, %v206_v6 }
  0x3b   : > { %v223_v10 = vmul.f32 0.57611686, %v207_v7  ;;  %v215_v15 = vmul.f32 0.21194156, %v207_v7  ;;  %s681_s20 = smov (!%p138_p6, %s393_s20), 7 }
  0x3c   : > { %s400_s21 = sshll.u32 %s681_s20, 4 }
  0x3d   : > { %s640_s24 = scalar_lea.vmem %s672_s1, %s400_s21 }
  0x40   : > { %274 = vrot.lane.b32.xlu1 %v209_v63, %s513_s19  ;;  %242 = vrot.lane.b32.xlu2 %v221_v0, %s512_s16 }
  0x41   : > { %272 = vrot.lane.b32.xlu0 %v208_v3, %s513_s19 }
  0x48   : > { %276 = vrot.lane.b32.xlu1 %v210_v8, %s513_s19  ;;  %244 = vrot.lane.b32.xlu2 %v222_v9, %s512_s16 }
  0x49   : > { %246 = vrot.lane.b32.xlu0 %v223_v10, %s512_s16 }
  0x50   : > { %282 = vrot.lane.b32.xlu1 %v213_v11, %s513_s19  ;;  %278 = vrot.lane.b32.xlu2 %v211_v12, %s513_s19 }
  0x51   : > { %280 = vrot.lane.b32.xlu0 %v212_v13, %s513_s19 }
  0x58   : > { %284 = vrot.lane.b32.xlu2 %v214_v14, %s513_s19 }
  0x59   : > { %286 = vrot.lane.b32.xlu0 %v215_v15, %s513_s19 }
  0x92   : > { %v241_v17 = vpop.permute.xlu2 %240 }
  0x93   : > { %v260_v39 = vadd.f32 %v241_v17, %v212_v13 }
  0x9a   : > { %v243_v16 = vpop.permute.xlu2 %242 }
  0x9b   : > { %v261_v36 = vadd.f32 %v243_v16, %v213_v11 }
  0xa2   : > { %v237_v18 = vpop.permute.xlu1 %236  ;;  %v245_v20 = vpop.permute.xlu2 %244 }
  0xa3   : > { %v233_v19 = vpop.permute.xlu0 %232  ;;  %v258_v32 = vadd.f32 %v237_v18, %v210_v8  ;;  %v262_v37 = vadd.f32 %v245_v20, %v214_v14 }
  0xa4   : > { %v256_v28 = vadd.f32 %v233_v19, %v208_v3 }
  0xaa   : > { %v239_v21 = vpop.permute.xlu1 %238  ;;  %v279_v24 = vpop.permute.xlu2 %278 }
  0xab   : > { %v235_v22 = vpop.permute.xlu0 %234  ;;  %v259_v23 = vadd.f32 %v239_v21, %v211_v12 }
  0xac   : > { %v257_v25 = vadd.f32 %v235_v22, %v209_v63 }
  0xad   : > { %v299_v27 = vadd.f32 %v279_v24, %v259_v23 }
  0xaf   : > { %309 = vst.msk [vmem:[%s640_s24 + $0x18] sm:$0x3f] %vm306_vm0, %v299_v27 }
  0xb2   : > { %v275_v26 = vpop.permute.xlu1 %274  ;;  %v285_v40 = vpop.permute.xlu2 %284 }
  0xb3   : > { %v297_v29 = vadd.f32 %v275_v26, %v257_v25  ;;  %v273_v30 = vpop.permute.xlu0 %272  ;;  %v302_v44 = vadd.f32 %v285_v40, %v262_v37 }
  0xb4   : > { %v296_v31 = vadd.f32 %v273_v30, %v256_v28 }
  0xb5   : > { %307 = vst.msk [vmem:[%s640_s24 + $0x8] sm:$0x3f] %vm306_vm0, %v297_v29 }
  0xb6   : > { %305 = vst.msk [vmem:[%s640_s24] sm:$0xff] %vm304_vm1, %v296_v31 }
  0xb7   : > { %312 = vst.msk [vmem:[%s640_s24 + $0x30] sm:$0xff] %vm304_vm1, %v302_v44 }
  0xba   : > { %v277_v33 = vpop.permute.xlu1 %276 }
  0xbb   : > { %v298_v34 = vadd.f32 %v277_v33, %v258_v32  ;;  %v247_v35 = vpop.permute.xlu0 %246 }
  0xbc   : > { %v263_v45 = vadd.f32 %v247_v35, %v215_v15 }
  0xbd   : > { %308 = vst.msk [vmem:[%s640_s24 + $0x10] sm:$0xff] %vm304_vm1, %v298_v34 }
  0xc2   : > { %v283_v38 = vpop.permute.xlu1 %282 }
  0xc3   : > { %v301_v41 = vadd.f32 %v283_v38, %v261_v36  ;;  %v281_v42 = vpop.permute.xlu0 %280 }
  0xc4   : > { %v300_v43 = vadd.f32 %v281_v42, %v260_v39 }
  0xc5   : > { %311 = vst.msk [vmem:[%s640_s24 + $0x28] sm:$0x3f] %vm306_vm0, %v301_v41 }
  0xc6   : > { %310 = vst.msk [vmem:[%s640_s24 + $0x20] sm:$0xff] %vm304_vm1, %v300_v43 }
  0xcb   : > { %v287_v46 = vpop.permute.xlu0 %286 }
  0xcc   : > { %v303_v47 = vadd.f32 %v287_v46, %v263_v45 }
  0xce   : > { %313 = vst.msk [vmem:[%s640_s24 + $0x38] sm:$0x3f] %vm306_vm0, %v303_v47 }
  0xcf PF: > { %p11_p7 = scmp.ge.s32.totalorder %s544_s11, 4   ;;  %s676_s6 = smov %s500_s7 }
  0xd0   : > { %s677_s7 = smov %s504_s8  ;;  %s678_s8 = smov %s554_s14 }
  0xd1   : > { %s679_s9 = smov %s544_s11  ;;  %13 = sbr.rel (!%p11_p7) target bundleno = 3 (0x3), region = 64 }
  0xd6   :  { %338 = vsyncpa [#allocation3], 1 }
  0xd7   :  { %340 = vsyncpa [#allocation3 + $0x1], 1 }

</bundles_post_ra>
